<compile_context>
chip_gen: v7x
topology: tpu7x:2x2x1
jax: 0.10.0
libtpu: 0.0.40
codegen_flags: <defaults>
</compile_context>

<pallas_src>
import functools

import jax
import jax.numpy as jnp
from jax.experimental import pallas as pl
from jax.experimental.pallas import tpu as pltpu


def _aniso_upsample_kernel(r_ref, x_ref, o_ref, *, acc_dtype):
    # r_ref: (W, s*s*W)  one-hot replication matrix (constant across steps)
    # x_ref: (TM, W)     TM flattened (n, c, d, h) rows
    # o_ref: (TM, s*s*W) replicated rows; wrapper reshape gives (.., s*H, s*W)
    y = jnp.dot(x_ref[...], r_ref[...], preferred_element_type=acc_dtype)
    o_ref[...] = y.astype(o_ref.dtype)


def _choose_tm(M, W, nout, itemsize, acc_itemsize, sublane, budget_bytes):
    """Pick the per-step row count TM.

    Sizes for pipeline depth (>= ~8 grid steps, output block <= ~8 MiB) while
    keeping double-buffered input + output blocks, the accumulator and the
    resident replication matrix inside `budget_bytes`.
    """
    per_row = (2 * W + 2 * nout) * itemsize + nout * acc_itemsize
    fixed = 2 * W * nout * itemsize            # resident replication matrix
    tm_budget = max(sublane, (budget_bytes - fixed) // max(per_row, 1))
    tm_out = max(sublane, (8 * 1024 * 1024) // max(nout * itemsize, 1))
    tm_steps = max(sublane, pl.cdiv(M, 8))     # >= ~8 steps (>= 4 per TC on v7x)
    tm = int(min(tm_budget, tm_out, tm_steps, M))
    if tm >= sublane:
        tm = (tm // sublane) * sublane          # sublane-packed blocks
        # Prefer a TM that divides M (avoids a masked partial last block),
        # but never shrink below half the target just to divide evenly.
        t = tm
        while t >= max(sublane, tm // 2):
            if M % t == 0:
                tm = t
                break
            t -= sublane
    return max(1, min(tm, M))


def anisotropic_upsample(x, scale_factor):
    N, C, D, H, W = x.shape
    s = int(scale_factor)
    sH, sW = s * H, s * W
    nout = s * sW                              # merged (H, W) replication width
    M = N * C * D * H

    if not jnp.issubdtype(x.dtype, jnp.floating):
        # TODO(synk): integer dtypes need a non-MXU replication path (v7x MXU
        # has no integer support); only float inputs are handled here.
        raise NotImplementedError("anisotropic_upsample: float dtypes only")

    itemsize = jnp.dtype(x.dtype).itemsize
    sublane = max(8, 32 // itemsize)           # 8 f32, 16 bf16, 32 int8/fp8
    acc_dtype = jnp.float32 if x.dtype == jnp.float32 else x.dtype
    acc_itemsize = jnp.dtype(acc_dtype).itemsize

    # Flatten to 2D: rows are (n, c, d, h), columns are w.
    xf = x.reshape(M, W)

    # Merged one-hot replication matrix: R[w, r*sW + j] = (w == j // s), so
    # out2d[m, r*sW + j] = xf[m, j // s]  -> exact nearest-neighbour copy for
    # both the sublane (H) and lane (W) replication in a single matmul.
    src = (jnp.arange(nout, dtype=jnp.int32) % sW) // s
    rep = (jnp.arange(W, dtype=jnp.int32)[:, None] == src[None, :]).astype(x.dtype)

    # ---- VMEM budget & block sizing -------------------------------------
    try:
        vmem_cap = int(pltpu.get_tpu_info().vmem_capacity_bytes)
    except Exception:
        vmem_cap = 64 * 1024 * 1024            # conservative (v7x per-TC VMEM)
    # Live-buffer budget: comfortably under the scoped limit on every chip.
    budget = min(int(0.5 * vmem_cap), 48 * 1024 * 1024)

    tm = _choose_tm(M, W, nout, itemsize, acc_itemsize, sublane, budget)
    grid = (pl.cdiv(M, tm),)

    # Declare only what we need (plus headroom); spare VMEM buys nothing once
    # the HBM roofline is hit, and pushing toward capacity hurts on v7x.
    need = 2 * W * nout * itemsize + tm * ((2 * W + 2 * nout) * itemsize
                                           + nout * acc_itemsize)
    vmem_limit = int(min(max(need * 3 // 2, 16 * 1024 * 1024),
                         int(0.75 * vmem_cap)))

    kernel = functools.partial(_aniso_upsample_kernel, acc_dtype=acc_dtype)

    # TODO(synk): for very small W (< ~32 lanes) the MXU contraction dim is
    # mostly padding; folding several H rows into the K dim would fix that.
    out2d = pl.pallas_call(
        kernel,
        out_shape=jax.ShapeDtypeStruct((M, nout), x.dtype),
        grid=grid,
        in_specs=[
            pl.BlockSpec((W, nout), lambda i: (0, 0)),   # resident, fetched once
            pl.BlockSpec((tm, W), lambda i: (i, 0)),
        ],
        out_specs=pl.BlockSpec((tm, nout), lambda i: (i, 0)),
        compiler_params=pltpu.CompilerParams(
            dimension_semantics=("parallel",),
            vmem_limit_bytes=vmem_limit,
        ),
    )(rep, xf)

    # Contiguous (zero-cost) view: (M, s*s*W) and (N, C, D, s*H, s*W) share
    # identical row-major flat indexing.
    return out2d.reshape(N, C, D, sH, sW)


if __name__ == "__main__":
    key = jax.random.PRNGKey(0)
    N, C, D, H, W = 2, 3, 4, 8, 16
    scale = 2
    x = jax.random.normal(key, (N, C, D, H, W), dtype=jnp.float32)

    y = anisotropic_upsample(x, scale)
    y = jax.block_until_ready(y)

    # Reference: nearest upsample of H, W only (D untouched), matching
    # F.interpolate(x.view(N, C*D, H, W), scale_factor=2, mode='nearest').
    ref = jnp.repeat(jnp.repeat(x, scale, axis=3), scale, axis=4)
    assert y.shape == (N, C, D, scale * H, scale * W), y.shape
    assert bool(jnp.array_equal(y, ref)), "mismatch vs reference nearest upsample"
    print("KERNEL_OK")
</pallas_src>

<mosaic_0001>
module attributes {stable_mosaic.version = 11 : i64} {
  func.func @_aniso_upsample_kernel(%arg0: i32, %arg1: memref<16x64xf32, #tpu.memory_space<vmem>>, %arg2: memref<24x16xf32, #tpu.memory_space<vmem>>, %arg3: memref<24x64xf32, #tpu.memory_space<vmem>>) attributes {dimension_semantics = [#tpu.dimension_semantics<parallel>], iteration_bounds = array<i64: 8>, scalar_prefetch = 0 : i64, scratch_operands = 0 : i64, tpu.core_type = #tpu.core_type<tc>, window_params = [{pipeline_mode = #tpu.pipeline_mode<synchronous>, transform_indices = @transform_0, window_bounds = array<i64: 16, 64>}, {transform_indices = @transform_1, window_bounds = array<i64: 24, 16>}, {transform_indices = @transform_2, window_bounds = array<i64: 24, 64>}]} {
    %c0 = arith.constant 0 : index
    %c0_0 = arith.constant 0 : index
    %0 = vector.load %arg2[%c0, %c0_0] : memref<24x16xf32, #tpu.memory_space<vmem>>, vector<24x16xf32>
    %c0_1 = arith.constant 0 : index
    %c0_2 = arith.constant 0 : index
    %1 = vector.load %arg1[%c0_1, %c0_2] : memref<16x64xf32, #tpu.memory_space<vmem>>, vector<16x64xf32>
    %cst = arith.constant dense<0.000000e+00> : vector<24x64xf32>
    %2 = tpu.matmul %0, %1, %cst {dimension_numbers = #tpu.dot_dimension_numbers<[1], [0], [0], [1], [0, 0, 1, 1], [], []>} : vector<24x16xf32>, vector<16x64xf32>, vector<24x64xf32> -> vector<24x64xf32>
    %c0_3 = arith.constant 0 : index
    %c0_4 = arith.constant 0 : index
    %3 = vector.load %arg3[%c0_3, %c0_4] : memref<24x64xf32, #tpu.memory_space<vmem>>, vector<24x64xf32>
    tpu.vector_store %arg3[%c0_3, %c0_4], %2 {strides = array<i32>} : memref<24x64xf32, #tpu.memory_space<vmem>>, vector<24x64xf32>,
    return
  }
  func.func @transform_0(%arg0: i32) -> (i32, i32) {
    %c0_i32 = arith.constant 0 : i32
    %c0_i32_0 = arith.constant 0 : i32
    %c0_i32_1 = arith.constant 0 : i32
    return %c0_i32, %c0_i32_0 : i32, i32
  }
  func.func @transform_1(%arg0: i32) -> (i32, i32) {
    %c0_i32 = arith.constant 0 : i32
    %c0_i32_0 = arith.constant 0 : i32
    return %arg0, %c0_i32 : i32, i32
  }
  func.func @transform_2(%arg0: i32) -> (i32, i32) {
    %c0_i32 = arith.constant 0 : i32
    %c0_i32_0 = arith.constant 0 : i32
    return %arg0, %c0_i32 : i32, i32
  }
}

</mosaic_0001>

<bundles_post_ra>
// kernel: tpu_custom_call.1
= control target key start
LH: loop header
LB: loop body
LE: loop exit
PB: predicated region body
PF: predicated region fallthrough
CT: control target
= control target key end

     0   :  { %s374_s9 = smov 0   ;;  %s397_s0 = inlined_call_operand.vmem [shape: f32[16,64], index: 0, kind: input, shape index: {}]   ;;  %s398_s1 = inlined_call_operand.vmem [shape: f32[192,16], index: 1, kind: input, shape index: {}]   ;;  %s399_s2 = inlined_call_operand.vmem [shape: f32[192,64], index: 2, kind: output, shape index: {}]  }
   0x1 LB: > { %s302_s10 = sadd.s32 4294967295, %s354_s9   ;;  %p306_p0 = scmp.ge.s32.totalorder %s354_s9, 1  ;;  %s354_s9 = sphi %s374_s9, %s12_s9  }
   0x2   : > { %p113_p1 = scmp.lt.s32.totalorder %s354_s9, 9 }
   0x4   : > { %p114_p2 = pnand %p306_p0, %p113_p1 }
   0x5   : > { %v150_v0 = vld [vmem:[%s397_s0] sm:$0xff] (!%p114_p2)  ;;  %v151_v1 = vld [vmem:[%s397_s0 + $0x8] sm:$0xff] (!%p114_p2)  ;;  %s135_s15 = smul.u32 (!%p114_p2), 3, %s302_s10  ;;  %v356_v2 = vmov (!%p114_p2), 0.0|0.0   ;;  %vm357_vm0 = vmmov (!%p114_p2), 0   ;;  %v358_v4 = vmov (!%p114_p2), 0.0  }
   0x6   : > { %117 = sbr.rel (%p114_p2) target bundleno = 234 (0xea), region = 28  ;;  %335 = vmatprep.subr.bf16.mxu1 (!%p114_p2), %v356_v2  ;;  %v333_v3 = vpack.c.bf16 (!%p114_p2), %v151_v1, %v150_v0  ;;  %332 = vmatprep.subr.bf16.mxu0 (!%p114_p2), %v356_v2  ;;  %vm152_vm1 = vcmask (!%p114_p2), 130048   ;;  %vm242_vm2 = vcmask (!%p114_p2), 523264  }
   0x7   : > { %326 = vmatprep.mubr.msk.f32.mxu1 (!%p114_p2), %vm357_vm0, %v358_v4  ;;  %p136_p3 = scmp.lt.s32.totalorder (!%p114_p2), %s135_s15, 23  ;;  %323 = vmatprep.mubr.msk.f32.mxu0 (!%p114_p2), %vm357_vm0, %v358_v4 }
   0x8   : > { %336 = vmatpush3.bf16.msra.mxu1 (!%p114_p2), %v333_v3  ;;  %334 = vmatpush3.bf16.msra.mxu0 (!%p114_p2), %v333_v3 }
   0xd   : > { %s401_s15 = smov (!%p136_p3, %s135_s15), 23 }
   0xe   : > { %s307_s16 = sshll.u32 %s401_s15, 3 }
   0xf   : > { %s139_s19 = scalar_lea.vmem %s398_s1, %s307_s16  ;;  %s145_s22 = scalar_lea.vmem %s399_s2, %s307_s16 }
  0x10   : > { %v148_v5 = vld [vmem:[%s139_s19 + $0x8] sm:$0xff]  ;;  %v147_v6 = vld [vmem:[%s139_s19] sm:$0xff]  ;;  %v149_v7 = vld [vmem:[%s139_s19 + $0x10] sm:$0xff] }
  0x11   : > { %327 = vmatmul.mubr.msk.f32.vlgmr.msra.gmra.mrb[0].mxu1 %vm152_vm1, %v148_v5  ;;  %324 = vmatmul.mubr.msk.f32.vlgmr.msra.gmra.mrb[0].mxu0 %vm152_vm1, %v147_v6 }
  0x12   : > { %329 = vmatprep.mubr.msk.f32.mxu1 %vm357_vm0, %v358_v4 }
  0x15   : > { %330 = vmatmul.mubr.msk.f32.gmra.mrb[2].mxu1 %vm152_vm1, %v149_v7 }
  0xe4   : > { %v233_v8 = vpop.f32.mrb[0].mxu1  ;;  %v228_v9 = vpop.f32.mrb[0].mxu0 }
  0xe5   : > { %244 = vst.msk [vmem:[%s145_s22 + $0x8] sm:$0xff] %vm242_vm2, %v233_v8  ;;  %v328_v10 = vpop.f32.mrb[1].mxu1  ;;  %243 = vst.msk [vmem:[%s145_s22] sm:$0xff] %vm242_vm2, %v228_v9  ;;  %v325_v11 = vpop.f32.mrb[1].mxu0 }
  0xe8   : > { %v238_v12 = vpop.f32.mrb[2].mxu1 }
  0xe9   : > { %245 = vst.msk [vmem:[%s145_s22 + $0x10] sm:$0xff] %vm242_vm2, %v238_v12  ;;  %v331_v13 = vpop.f32.mrb[3].mxu1 }
  0xea PF: > { %s12_s9 = sadd.s32 1, %s354_s9  }
  0xeb   : > { %p9_p4 = scmp.ge.s32.totalorder %s12_s9, 10  }
  0xed   :  { %11 = sbr.rel (!%p9_p4) target bundleno = 1 (0x1), region = 58 }

</bundles_post_ra>
